<compile_context>
chip_gen: v5e
topology: v5e:2x2
jax: 0.10.0
libtpu: 0.0.40
codegen_flags: <defaults>
</compile_context>

<pallas_src>
import functools

import jax
import jax.numpy as jnp
from jax.experimental import pallas as pl
from jax.experimental.pallas import tpu as pltpu

# ---- UnifiedConfig (synthetic, deterministic) --------------------------------
NUM_FILTERS = 4        # UnifiedConfig.num_filters
KERNEL_SIZE = 3        # UnifiedConfig.kernel_size
ACID_SEQ_LENGTH = 16   # acid_seq_length (L)
BATCH = 2

L_OUT = ACID_SEQ_LENGTH - KERNEL_SIZE + 1          # conv output length
FLAT = NUM_FILTERS * L_OUT                          # flattened feature size per branch

_BRANCHES = ("INI", "PI", "RTI")   # stands in for DataCategory.{INI,PI,RTI}
NB = len(_BRANCHES)


# ---- Pallas kernel -----------------------------------------------------------
def _net_kernel(x_ref, w1_ref, b1_ref, w2_ref, b2_ref, out_ref,
                *, B, L, F, K, Lout, nb):
    """Single-invocation kernel, all 3 branches fused.

    x_ref  : (B, L)                 VMEM  input sequence (channel squeezed)
    w1_ref : (nb*F*K,)              SMEM  conv weights, flattened [br, f, k]
    b1_ref : (nb*F,)                SMEM  conv biases,  flattened [br, f]
    w2_ref : (nb*F*Lout, nb*L)      VMEM  block-diagonal linear weight (pre-transposed)
    b2_ref : (1, nb*L)              VMEM  concatenated linear biases
    out_ref: (B, nb*L)              VMEM  all three branch outputs side by side
    """
    x = x_ref[...]                                        # (B, L) f32

    # Hoist the K shifted-window slices once; reuse across all branches/filters.
    xs = [x[:, k:k + Lout] for k in range(K)]             # K x (B, Lout)

    # Conv1d + ReLU for every (branch, filter); weights read as SMEM scalars.
    cols = []
    for br in range(nb):
        for f in range(F):
            base = (br * F + f) * K
            h = xs[0] * w1_ref[base]
            for k in range(1, K):
                h = h + xs[k] * w1_ref[base + k]
            h = jnp.maximum(h + b1_ref[br * F + f], 0.0)  # ReLU
            cols.append(h)

    # Channel-major flatten across filters, branch-major across branches:
    # column index = br*F*Lout + f*Lout + t  -> matches block-diagonal W2 rows.
    h_all = jnp.concatenate(cols, axis=-1)                # (B, nb*F*Lout)

    # One fused matmul for all branches + biases added once.
    out = jnp.dot(h_all, w2_ref[...], preferred_element_type=jnp.float32)
    out_ref[...] = (out + b2_ref[...]).astype(out_ref.dtype)


def net_forward(x, params):
    """x: (B, 1, L) float32, NCW like PyTorch.  Returns dict of (B, L) outputs."""
    B, C, L = x.shape
    assert C == 1
    F, K = NUM_FILTERS, KERNEL_SIZE
    Lout = L - K + 1

    x2d = x[:, 0, :]                                              # (B, L)

    # Parameter packing (layout plumbing, done once outside the kernel).
    w1_flat = jnp.concatenate(
        [params[n]["conv_w"][:, 0, :].reshape(-1) for n in _BRANCHES])   # (NB*F*K,)
    b1_flat = jnp.concatenate(
        [params[n]["conv_b"] for n in _BRANCHES])                        # (NB*F,)
    # Block-diagonal linear weight: block br = lin_w_br^T of shape (F*Lout, L).
    w2_bd = jax.scipy.linalg.block_diag(
        *[params[n]["lin_w"].T for n in _BRANCHES])                      # (NB*F*Lout, NB*L)
    b2_cat = jnp.concatenate(
        [params[n]["lin_b"] for n in _BRANCHES])[None, :]                # (1, NB*L)

    kernel = functools.partial(_net_kernel, B=B, L=L, F=F, K=K, Lout=Lout, nb=NB)

    flops = 2 * B * (NB * F * Lout) * (NB * L) + 2 * B * NB * F * Lout * K
    bytes_accessed = 4 * (B * L + w2_bd.size + b2_cat.size + B * NB * L
                          + w1_flat.size + b1_flat.size)

    out = pl.pallas_call(
        kernel,
        out_shape=jax.ShapeDtypeStruct((B, NB * L), jnp.float32),
        in_specs=[
            pl.BlockSpec(memory_space=pltpu.MemorySpace.VMEM),   # x
            pl.BlockSpec(memory_space=pltpu.MemorySpace.SMEM),   # conv weights (scalars)
            pl.BlockSpec(memory_space=pltpu.MemorySpace.SMEM),   # conv biases  (scalars)
            pl.BlockSpec(memory_space=pltpu.MemorySpace.VMEM),   # block-diag linear weight
            pl.BlockSpec(memory_space=pltpu.MemorySpace.VMEM),   # linear biases
        ],
        out_specs=pl.BlockSpec(memory_space=pltpu.MemorySpace.VMEM),
        cost_estimate=pl.CostEstimate(flops=flops, transcendentals=0,
                                      bytes_accessed=bytes_accessed),
    )(x2d, w1_flat, b1_flat, w2_bd, b2_cat)

    return {name: out[:, i * L:(i + 1) * L] for i, name in enumerate(_BRANCHES)}


# ---- Parameter init (deterministic, synthetic) -------------------------------
def init_params(key):
    params = {}
    for name in _BRANCHES:
        key, k1, k2, k3, k4 = jax.random.split(key, 5)
        params[name] = {
            # nn.Conv1d(1, F, K): weight (F, 1, K), bias (F,)
            "conv_w": jax.random.normal(k1, (NUM_FILTERS, 1, KERNEL_SIZE), jnp.float32) * 0.1,
            "conv_b": jax.random.normal(k2, (NUM_FILTERS,), jnp.float32) * 0.1,
            # nn.Linear(F*Lout, L): weight (L, F*Lout), bias (L,)
            "lin_w": jax.random.normal(k3, (ACID_SEQ_LENGTH, FLAT), jnp.float32) * 0.1,
            "lin_b": jax.random.normal(k4, (ACID_SEQ_LENGTH,), jnp.float32) * 0.1,
        }
    return params


# ---- Pure-JAX reference for correctness check --------------------------------
def _ref_branch(x, p):
    B, _, L = x.shape
    Lout = L - KERNEL_SIZE + 1
    patches = jnp.stack([x[:, 0, k:k + Lout] for k in range(KERNEL_SIZE)], axis=-1)  # (B, Lout, K)
    conv = jnp.einsum("btk,fk->bft", patches, p["conv_w"][:, 0, :]) + p["conv_b"][None, :, None]
    h = jnp.maximum(conv, 0.0).reshape(B, NUM_FILTERS * Lout)   # channel-major flatten (nn.Flatten)
    return h @ p["lin_w"].T + p["lin_b"]


def ref_forward(x, params):
    return {name: _ref_branch(x, params[name]) for name in _BRANCHES}


if __name__ == "__main__":
    key = jax.random.PRNGKey(0)
    key, xk = jax.random.split(key)
    x = jax.random.normal(xk, (BATCH, 1, ACID_SEQ_LENGTH), jnp.float32)

    params = init_params(key)

    out = net_forward(x, params)
    jax.block_until_ready(out)

    ref = ref_forward(x, params)
    for name in _BRANCHES:
        assert out[name].shape == (BATCH, ACID_SEQ_LENGTH)
        if not jnp.allclose(out[name], ref[name], atol=1e-5, rtol=1e-5):
            raise AssertionError(f"mismatch in branch {name}")

    print("KERNEL_OK")
</pallas_src>

<mosaic_0001>
module attributes {stable_mosaic.version = 11 : i64} {
  func.func @_net_kernel(%arg0: memref<2x16xf32, #tpu.memory_space<vmem>>, %arg1: memref<36xf32, #tpu.memory_space<smem>>, %arg2: memref<12xf32, #tpu.memory_space<smem>>, %arg3: memref<168x48xf32, #tpu.memory_space<vmem>>, %arg4: memref<1x48xf32, #tpu.memory_space<vmem>>, %arg5: memref<2x48xf32, #tpu.memory_space<vmem>>) attributes {dimension_semantics = [], scalar_prefetch = 0 : i64, scratch_operands = 0 : i64, tpu.core_type = #tpu.core_type<tc>} {
    %c0 = arith.constant 0 : index
    %c0_0 = arith.constant 0 : index
    %0 = vector.load %arg0[%c0, %c0_0] : memref<2x16xf32, #tpu.memory_space<vmem>>, vector<2x16xf32>
    %1 = vector.extract_strided_slice %0 {offsets = [0, 0], sizes = [2, 14], strides = [1, 1]} : vector<2x16xf32> to vector<2x14xf32>
    %2 = vector.extract_strided_slice %0 {offsets = [0, 1], sizes = [2, 14], strides = [1, 1]} : vector<2x16xf32> to vector<2x14xf32>
    %3 = vector.extract_strided_slice %0 {offsets = [0, 2], sizes = [2, 14], strides = [1, 1]} : vector<2x16xf32> to vector<2x14xf32>
    %c0_1 = arith.constant 0 : index
    %4 = memref.load %arg1[%c0_1] : memref<36xf32, #tpu.memory_space<smem>>
    %5 = vector.broadcast %4 : f32 to vector<2x14xf32>
    %6 = arith.mulf %1, %5 : vector<2x14xf32>
    %c1 = arith.constant 1 : index
    %7 = memref.load %arg1[%c1] : memref<36xf32, #tpu.memory_space<smem>>
    %8 = vector.broadcast %7 : f32 to vector<2x14xf32>
    %9 = arith.mulf %2, %8 : vector<2x14xf32>
    %10 = arith.addf %6, %9 : vector<2x14xf32>
    %c2 = arith.constant 2 : index
    %11 = memref.load %arg1[%c2] : memref<36xf32, #tpu.memory_space<smem>>
    %12 = vector.broadcast %11 : f32 to vector<2x14xf32>
    %13 = arith.mulf %3, %12 : vector<2x14xf32>
    %14 = arith.addf %10, %13 : vector<2x14xf32>
    %c0_2 = arith.constant 0 : index
    %15 = memref.load %arg2[%c0_2] : memref<12xf32, #tpu.memory_space<smem>>
    %16 = vector.broadcast %15 : f32 to vector<2x14xf32>
    %17 = arith.addf %14, %16 : vector<2x14xf32>
    %cst = arith.constant 0.000000e+00 : f32
    %18 = vector.broadcast %cst : f32 to vector<2x14xf32>
    %19 = arith.maximumf %17, %18 : vector<2x14xf32>
    %c3 = arith.constant 3 : index
    %20 = memref.load %arg1[%c3] : memref<36xf32, #tpu.memory_space<smem>>
    %21 = vector.broadcast %20 : f32 to vector<2x14xf32>
    %22 = arith.mulf %1, %21 : vector<2x14xf32>
    %c4 = arith.constant 4 : index
    %23 = memref.load %arg1[%c4] : memref<36xf32, #tpu.memory_space<smem>>
    %24 = vector.broadcast %23 : f32 to vector<2x14xf32>
    %25 = arith.mulf %2, %24 : vector<2x14xf32>
    %26 = arith.addf %22, %25 : vector<2x14xf32>
    %c5 = arith.constant 5 : index
    %27 = memref.load %arg1[%c5] : memref<36xf32, #tpu.memory_space<smem>>
    %28 = vector.broadcast %27 : f32 to vector<2x14xf32>
    %29 = arith.mulf %3, %28 : vector<2x14xf32>
    %30 = arith.addf %26, %29 : vector<2x14xf32>
    %c1_3 = arith.constant 1 : index
    %31 = memref.load %arg2[%c1_3] : memref<12xf32, #tpu.memory_space<smem>>
    %32 = vector.broadcast %31 : f32 to vector<2x14xf32>
    %33 = arith.addf %30, %32 : vector<2x14xf32>
    %cst_4 = arith.constant 0.000000e+00 : f32
    %34 = vector.broadcast %cst_4 : f32 to vector<2x14xf32>
    %35 = arith.maximumf %33, %34 : vector<2x14xf32>
    %c6 = arith.constant 6 : index
    %36 = memref.load %arg1[%c6] : memref<36xf32, #tpu.memory_space<smem>>
    %37 = vector.broadcast %36 : f32 to vector<2x14xf32>
    %38 = arith.mulf %1, %37 : vector<2x14xf32>
    %c7 = arith.constant 7 : index
    %39 = memref.load %arg1[%c7] : memref<36xf32, #tpu.memory_space<smem>>
    %40 = vector.broadcast %39 : f32 to vector<2x14xf32>
    %41 = arith.mulf %2, %40 : vector<2x14xf32>
    %42 = arith.addf %38, %41 : vector<2x14xf32>
    %c8 = arith.constant 8 : index
    %43 = memref.load %arg1[%c8] : memref<36xf32, #tpu.memory_space<smem>>
    %44 = vector.broadcast %43 : f32 to vector<2x14xf32>
    %45 = arith.mulf %3, %44 : vector<2x14xf32>
    %46 = arith.addf %42, %45 : vector<2x14xf32>
    %c2_5 = arith.constant 2 : index
    %47 = memref.load %arg2[%c2_5] : memref<12xf32, #tpu.memory_space<smem>>
    %48 = vector.broadcast %47 : f32 to vector<2x14xf32>
    %49 = arith.addf %46, %48 : vector<2x14xf32>
    %cst_6 = arith.constant 0.000000e+00 : f32
    %50 = vector.broadcast %cst_6 : f32 to vector<2x14xf32>
    %51 = arith.maximumf %49, %50 : vector<2x14xf32>
    %c9 = arith.constant 9 : index
    %52 = memref.load %arg1[%c9] : memref<36xf32, #tpu.memory_space<smem>>
    %53 = vector.broadcast %52 : f32 to vector<2x14xf32>
    %54 = arith.mulf %1, %53 : vector<2x14xf32>
    %c10 = arith.constant 10 : index
    %55 = memref.load %arg1[%c10] : memref<36xf32, #tpu.memory_space<smem>>
    %56 = vector.broadcast %55 : f32 to vector<2x14xf32>
    %57 = arith.mulf %2, %56 : vector<2x14xf32>
    %58 = arith.addf %54, %57 : vector<2x14xf32>
    %c11 = arith.constant 11 : index
    %59 = memref.load %arg1[%c11] : memref<36xf32, #tpu.memory_space<smem>>
    %60 = vector.broadcast %59 : f32 to vector<2x14xf32>
    %61 = arith.mulf %3, %60 : vector<2x14xf32>
    %62 = arith.addf %58, %61 : vector<2x14xf32>
    %c3_7 = arith.constant 3 : index
    %63 = memref.load %arg2[%c3_7] : memref<12xf32, #tpu.memory_space<smem>>
    %64 = vector.broadcast %63 : f32 to vector<2x14xf32>
    %65 = arith.addf %62, %64 : vector<2x14xf32>
    %cst_8 = arith.constant 0.000000e+00 : f32
    %66 = vector.broadcast %cst_8 : f32 to vector<2x14xf32>
    %67 = arith.maximumf %65, %66 : vector<2x14xf32>
    %c12 = arith.constant 12 : index
    %68 = memref.load %arg1[%c12] : memref<36xf32, #tpu.memory_space<smem>>
    %69 = vector.broadcast %68 : f32 to vector<2x14xf32>
    %70 = arith.mulf %1, %69 : vector<2x14xf32>
    %c13 = arith.constant 13 : index
    %71 = memref.load %arg1[%c13] : memref<36xf32, #tpu.memory_space<smem>>
    %72 = vector.broadcast %71 : f32 to vector<2x14xf32>
    %73 = arith.mulf %2, %72 : vector<2x14xf32>
    %74 = arith.addf %70, %73 : vector<2x14xf32>
    %c14 = arith.constant 14 : index
    %75 = memref.load %arg1[%c14] : memref<36xf32, #tpu.memory_space<smem>>
    %76 = vector.broadcast %75 : f32 to vector<2x14xf32>
    %77 = arith.mulf %3, %76 : vector<2x14xf32>
    %78 = arith.addf %74, %77 : vector<2x14xf32>
    %c4_9 = arith.constant 4 : index
    %79 = memref.load %arg2[%c4_9] : memref<12xf32, #tpu.memory_space<smem>>
    %80 = vector.broadcast %79 : f32 to vector<2x14xf32>
    %81 = arith.addf %78, %80 : vector<2x14xf32>
    %cst_10 = arith.constant 0.000000e+00 : f32
    %82 = vector.broadcast %cst_10 : f32 to vector<2x14xf32>
    %83 = arith.maximumf %81, %82 : vector<2x14xf32>
    %c15 = arith.constant 15 : index
    %84 = memref.load %arg1[%c15] : memref<36xf32, #tpu.memory_space<smem>>
    %85 = vector.broadcast %84 : f32 to vector<2x14xf32>
    %86 = arith.mulf %1, %85 : vector<2x14xf32>
    %c16 = arith.constant 16 : index
    %87 = memref.load %arg1[%c16] : memref<36xf32, #tpu.memory_space<smem>>
    %88 = vector.broadcast %87 : f32 to vector<2x14xf32>
    %89 = arith.mulf %2, %88 : vector<2x14xf32>
    %90 = arith.addf %86, %89 : vector<2x14xf32>
    %c17 = arith.constant 17 : index
    %91 = memref.load %arg1[%c17] : memref<36xf32, #tpu.memory_space<smem>>
    %92 = vector.broadcast %91 : f32 to vector<2x14xf32>
    %93 = arith.mulf %3, %92 : vector<2x14xf32>
    %94 = arith.addf %90, %93 : vector<2x14xf32>
    %c5_11 = arith.constant 5 : index
    %95 = memref.load %arg2[%c5_11] : memref<12xf32, #tpu.memory_space<smem>>
    %96 = vector.broadcast %95 : f32 to vector<2x14xf32>
    %97 = arith.addf %94, %96 : vector<2x14xf32>
    %cst_12 = arith.constant 0.000000e+00 : f32
    %98 = vector.broadcast %cst_12 : f32 to vector<2x14xf32>
    %99 = arith.maximumf %97, %98 : vector<2x14xf32>
    %c18 = arith.constant 18 : index
    %100 = memref.load %arg1[%c18] : memref<36xf32, #tpu.memory_space<smem>>
    %101 = vector.broadcast %100 : f32 to vector<2x14xf32>
    %102 = arith.mulf %1, %101 : vector<2x14xf32>
    %c19 = arith.constant 19 : index
    %103 = memref.load %arg1[%c19] : memref<36xf32, #tpu.memory_space<smem>>
    %104 = vector.broadcast %103 : f32 to vector<2x14xf32>
    %105 = arith.mulf %2, %104 : vector<2x14xf32>
    %106 = arith.addf %102, %105 : vector<2x14xf32>
    %c20 = arith.constant 20 : index
    %107 = memref.load %arg1[%c20] : memref<36xf32, #tpu.memory_space<smem>>
    %108 = vector.broadcast %107 : f32 to vector<2x14xf32>
    %109 = arith.mulf %3, %108 : vector<2x14xf32>
    %110 = arith.addf %106, %109 : vector<2x14xf32>
    %c6_13 = arith.constant 6 : index
    %111 = memref.load %arg2[%c6_13] : memref<12xf32, #tpu.memory_space<smem>>
    %112 = vector.broadcast %111 : f32 to vector<2x14xf32>
    %113 = arith.addf %110, %112 : vector<2x14xf32>
    %cst_14 = arith.constant 0.000000e+00 : f32
    %114 = vector.broadcast %cst_14 : f32 to vector<2x14xf32>
    %115 = arith.maximumf %113, %114 : vector<2x14xf32>
    %c21 = arith.constant 21 : index
    %116 = memref.load %arg1[%c21] : memref<36xf32, #tpu.memory_space<smem>>
    %117 = vector.broadcast %116 : f32 to vector<2x14xf32>
    %118 = arith.mulf %1, %117 : vector<2x14xf32>
    %c22 = arith.constant 22 : index
    %119 = memref.load %arg1[%c22] : memref<36xf32, #tpu.memory_space<smem>>
    %120 = vector.broadcast %119 : f32 to vector<2x14xf32>
    %121 = arith.mulf %2, %120 : vector<2x14xf32>
    %122 = arith.addf %118, %121 : vector<2x14xf32>
    %c23 = arith.constant 23 : index
    %123 = memref.load %arg1[%c23] : memref<36xf32, #tpu.memory_space<smem>>
    %124 = vector.broadcast %123 : f32 to vector<2x14xf32>
    %125 = arith.mulf %3, %124 : vector<2x14xf32>
    %126 = arith.addf %122, %125 : vector<2x14xf32>
    %c7_15 = arith.constant 7 : index
    %127 = memref.load %arg2[%c7_15] : memref<12xf32, #tpu.memory_space<smem>>
    %128 = vector.broadcast %127 : f32 to vector<2x14xf32>
    %129 = arith.addf %126, %128 : vector<2x14xf32>
    %cst_16 = arith.constant 0.000000e+00 : f32
    %130 = vector.broadcast %cst_16 : f32 to vector<2x14xf32>
    %131 = arith.maximumf %129, %130 : vector<2x14xf32>
    %c24 = arith.constant 24 : index
    %132 = memref.load %arg1[%c24] : memref<36xf32, #tpu.memory_space<smem>>
    %133 = vector.broadcast %132 : f32 to vector<2x14xf32>
    %134 = arith.mulf %1, %133 : vector<2x14xf32>
    %c25 = arith.constant 25 : index
    %135 = memref.load %arg1[%c25] : memref<36xf32, #tpu.memory_space<smem>>
    %136 = vector.broadcast %135 : f32 to vector<2x14xf32>
    %137 = arith.mulf %2, %136 : vector<2x14xf32>
    %138 = arith.addf %134, %137 : vector<2x14xf32>
    %c26 = arith.constant 26 : index
    %139 = memref.load %arg1[%c26] : memref<36xf32, #tpu.memory_space<smem>>
    %140 = vector.broadcast %139 : f32 to vector<2x14xf32>
    %141 = arith.mulf %3, %140 : vector<2x14xf32>
    %142 = arith.addf %138, %141 : vector<2x14xf32>
    %c8_17 = arith.constant 8 : index
    %143 = memref.load %arg2[%c8_17] : memref<12xf32, #tpu.memory_space<smem>>
    %144 = vector.broadcast %143 : f32 to vector<2x14xf32>
    %145 = arith.addf %142, %144 : vector<2x14xf32>
    %cst_18 = arith.constant 0.000000e+00 : f32
    %146 = vector.broadcast %cst_18 : f32 to vector<2x14xf32>
    %147 = arith.maximumf %145, %146 : vector<2x14xf32>
    %c27 = arith.constant 27 : index
    %148 = memref.load %arg1[%c27] : memref<36xf32, #tpu.memory_space<smem>>
    %149 = vector.broadcast %148 : f32 to vector<2x14xf32>
    %150 = arith.mulf %1, %149 : vector<2x14xf32>
    %c28 = arith.constant 28 : index
    %151 = memref.load %arg1[%c28] : memref<36xf32, #tpu.memory_space<smem>>
    %152 = vector.broadcast %151 : f32 to vector<2x14xf32>
    %153 = arith.mulf %2, %152 : vector<2x14xf32>
    %154 = arith.addf %150, %153 : vector<2x14xf32>
    %c29 = arith.constant 29 : index
    %155 = memref.load %arg1[%c29] : memref<36xf32, #tpu.memory_space<smem>>
    %156 = vector.broadcast %155 : f32 to vector<2x14xf32>
    %157 = arith.mulf %3, %156 : vector<2x14xf32>
    %158 = arith.addf %154, %157 : vector<2x14xf32>
    %c9_19 = arith.constant 9 : index
    %159 = memref.load %arg2[%c9_19] : memref<12xf32, #tpu.memory_space<smem>>
    %160 = vector.broadcast %159 : f32 to vector<2x14xf32>
    %161 = arith.addf %158, %160 : vector<2x14xf32>
    %cst_20 = arith.constant 0.000000e+00 : f32
    %162 = vector.broadcast %cst_20 : f32 to vector<2x14xf32>
    %163 = arith.maximumf %161, %162 : vector<2x14xf32>
    %c30 = arith.constant 30 : index
    %164 = memref.load %arg1[%c30] : memref<36xf32, #tpu.memory_space<smem>>
    %165 = vector.broadcast %164 : f32 to vector<2x14xf32>
    %166 = arith.mulf %1, %165 : vector<2x14xf32>
    %c31 = arith.constant 31 : index
    %167 = memref.load %arg1[%c31] : memref<36xf32, #tpu.memory_space<smem>>
    %168 = vector.broadcast %167 : f32 to vector<2x14xf32>
    %169 = arith.mulf %2, %168 : vector<2x14xf32>
    %170 = arith.addf %166, %169 : vector<2x14xf32>
    %c32 = arith.constant 32 : index
    %171 = memref.load %arg1[%c32] : memref<36xf32, #tpu.memory_space<smem>>
    %172 = vector.broadcast %171 : f32 to vector<2x14xf32>
    %173 = arith.mulf %3, %172 : vector<2x14xf32>
    %174 = arith.addf %170, %173 : vector<2x14xf32>
    %c10_21 = arith.constant 10 : index
    %175 = memref.load %arg2[%c10_21] : memref<12xf32, #tpu.memory_space<smem>>
    %176 = vector.broadcast %175 : f32 to vector<2x14xf32>
    %177 = arith.addf %174, %176 : vector<2x14xf32>
    %cst_22 = arith.constant 0.000000e+00 : f32
    %178 = vector.broadcast %cst_22 : f32 to vector<2x14xf32>
    %179 = arith.maximumf %177, %178 : vector<2x14xf32>
    %c33 = arith.constant 33 : index
    %180 = memref.load %arg1[%c33] : memref<36xf32, #tpu.memory_space<smem>>
    %181 = vector.broadcast %180 : f32 to vector<2x14xf32>
    %182 = arith.mulf %1, %181 : vector<2x14xf32>
    %c34 = arith.constant 34 : index
    %183 = memref.load %arg1[%c34] : memref<36xf32, #tpu.memory_space<smem>>
    %184 = vector.broadcast %183 : f32 to vector<2x14xf32>
    %185 = arith.mulf %2, %184 : vector<2x14xf32>
    %186 = arith.addf %182, %185 : vector<2x14xf32>
    %c35 = arith.constant 35 : index
    %187 = memref.load %arg1[%c35] : memref<36xf32, #tpu.memory_space<smem>>
    %188 = vector.broadcast %187 : f32 to vector<2x14xf32>
    %189 = arith.mulf %3, %188 : vector<2x14xf32>
    %190 = arith.addf %186, %189 : vector<2x14xf32>
    %c11_23 = arith.constant 11 : index
    %191 = memref.load %arg2[%c11_23] : memref<12xf32, #tpu.memory_space<smem>>
    %192 = vector.broadcast %191 : f32 to vector<2x14xf32>
    %193 = arith.addf %190, %192 : vector<2x14xf32>
    %cst_24 = arith.constant 0.000000e+00 : f32
    %194 = vector.broadcast %cst_24 : f32 to vector<2x14xf32>
    %195 = arith.maximumf %193, %194 : vector<2x14xf32>
    %196 = tpu.concatenate %19, %35, %51, %67, %83, %99, %115, %131, %147, %163, %179, %195 in 1 : vector<2x14xf32>, vector<2x14xf32>, vector<2x14xf32>, vector<2x14xf32>, vector<2x14xf32>, vector<2x14xf32>, vector<2x14xf32>, vector<2x14xf32>, vector<2x14xf32>, vector<2x14xf32>, vector<2x14xf32>, vector<2x14xf32> -> vector<2x168xf32>
    %c0_25 = arith.constant 0 : index
    %c0_26 = arith.constant 0 : index
    %197 = vector.load %arg3[%c0_25, %c0_26] : memref<168x48xf32, #tpu.memory_space<vmem>>, vector<168x48xf32>
    %cst_27 = arith.constant dense<0.000000e+00> : vector<2x48xf32>
    %198 = tpu.matmul %196, %197, %cst_27 {dimension_numbers = #tpu.dot_dimension_numbers<[1], [0], [0], [1], [0, 0, 1, 1], [], []>} : vector<2x168xf32>, vector<168x48xf32>, vector<2x48xf32> -> vector<2x48xf32>
    %c0_28 = arith.constant 0 : index
    %c0_29 = arith.constant 0 : index
    %199 = vector.load %arg4[%c0_28, %c0_29] : memref<1x48xf32, #tpu.memory_space<vmem>>, vector<1x48xf32>
    %200 = vector.broadcast %199 : vector<1x48xf32> to vector<2x48xf32>
    %201 = arith.addf %198, %200 : vector<2x48xf32>
    %c0_30 = arith.constant 0 : index
    %c0_31 = arith.constant 0 : index
    %202 = vector.load %arg5[%c0_30, %c0_31] : memref<2x48xf32, #tpu.memory_space<vmem>>, vector<2x48xf32>
    tpu.vector_store %arg5[%c0_30, %c0_31], %201 {strides = array<i32>} : memref<2x48xf32, #tpu.memory_space<vmem>>, vector<2x48xf32>,
    return
  }
}

</mosaic_0001>

<bundles_post_ra>
// kernel: tpu_custom_call.1
= control target key start
LH: loop header
LB: loop body
LE: loop exit
PB: predicated region body
PF: predicated region fallthrough
CT: control target
= control target key end

     0   :  { %10 = vsyncpa [#allocation4], 0  ;;  %s793_s0 = inlined_call_operand.vmem [shape: f32[2,16], index: 0, kind: input, shape index: {}]   ;;  %s794_s1 = inlined_call_operand.vmem [shape: f32[36], index: 1, kind: input, shape index: {}]   ;;  %s795_s2 = inlined_call_operand.vmem [shape: f32[12], index: 2, kind: input, shape index: {}]   ;;  %s796_s3 = inlined_call_operand.vmem [shape: f32[168,48], index: 3, kind: input, shape index: {}]   ;;  %s797_s4 = inlined_call_operand.vmem [shape: f32[1,48], index: 4, kind: input, shape index: {}]   ;;  %s798_s5 = inlined_call_operand.hbm [shape: f32[2,48], index: 5, kind: output, shape index: {}]  }
   0x1   :  { %11 = vsyncpa [#allocation6], 0 }
   0x2   :  { %12 = vsyncpa [#allocation3], 0  ;;  %s20_s20 = sshll.u32 %s794_s1, 4  ;;  %s29_s23 = sshll.u32 %s795_s2, 4  ;;  %s21_s20 = int_to_ptr.vmem [resolvable:$true] %s20_s20  ;;  %s30_s23 = int_to_ptr.vmem [resolvable:$true] %s29_s23 }
   0x3   :  { %s595_s24 = smov [#allocation2]   ;;  %s596_s25 = smov [#allocation5]  }
   0x4   :  { %23 = dma.vmem_to_smem %s21_s20, 16, %s595_s24, [#allocation4]  }
   0x5   :  { %32 = dma.vmem_to_smem %s30_s23, 16, %s596_s25, [#allocation6]  }
   0x6   :  { %589 = dma.done.wait [#allocation4], 16  }
   0x7   :  { %590 = vsyncadd [#allocation4], 4294967280 }
   0x8   :  { %591 = dma.done.wait [#allocation6], 16  }
   0x9   :  { %592 = vsyncadd [#allocation6], 4294967280 }
   0xa   :  { %45 = sfence }
   0xb   :  { %s482_s26 = sld [smem:[#allocation2 + $0x5]]  ;;  %v649_v0 = vld [vmem:[%s793_s0] sm:$0x3]  ;;  %s597_s7 = smov 126   ;;  %vm367_vm0 = vcmask 113664   ;;  %vm369_vm1 = vcmask 228352  }
   0xc   :  { %s481_s27 = sld [smem:[#allocation2 + $0x4]]  ;;  %s598_s8 = smov 127   ;;  %vm371_vm2 = vcmask 343040   ;;  %vm373_vm3 = vcmask 457728   ;;  %vm375_vm4 = vcmask 572416   ;;  %vm377_vm5 = vcmask 687104  }
   0xd   :  { %s486_s28 = sld [smem:[#allocation2 + $0x8]]  ;;  %vm379_vm6 = vcmask 801792   ;;  %vm381_vm7 = vcmask 916480   ;;  %vm383_vm8 = vcmask 1031168   ;;  %vm385_vm9 = vcmask 97280  }
   0xe   :  { %s489_s29 = sld [smem:[#allocation2 + $0xa]]  ;;  %vm387_vm10 = vcmask 211968   ;;  %vm414_vm11 = vcmask 326656   ;;  %vm458_vm12 = vcmask 386048  }
   0xf   :  { %s485_s2 = sld [smem:[#allocation2 + $0x7]] }
  0x10   :  { %s493_s6 = sld [smem:[#allocation2 + $0xd]] }
  0x11   :  { %v82_v1 = vstv %s482_s26  ;;  %s497_s0 = sld [smem:[#allocation2 + $0x10]] }
  0x12   :  { %v83_v2 = vmul.f32 %v82_v1, %v649_v0  ;;  %v74_v3 = vstv %s481_s27  ;;  %s490_s9 = sld [smem:[#allocation2 + $0xb]] }
  0x13   :  { %v75_v4 = vmul.f32 %v74_v3, %v649_v0  ;;  %v105_v5 = vstv %s486_s28  ;;  %s494_s10 = sld [smem:[#allocation2 + $0xe]] }
  0x14   :  { %85 = vrot.lane.b32.xlu1 %v83_v2, %s597_s7  ;;  %v106_v6 = vmul.f32 %v105_v5, %v649_v0  ;;  %v120_v7 = vstv %s489_s29  ;;  %s498_s11 = sld [smem:[#allocation2 + $0x11]] }
  0x15   :  { %77 = vrot.lane.b32.xlu0 %v75_v4, %s598_s8  ;;  %v97_v8 = vstv %s485_s2  ;;  %v121_v10 = vmul.f32 %v120_v7, %v649_v0  ;;  %s501_s12 = sld [smem:[#allocation2 + $0x13]] }
  0x16   :  { %108 = vrot.lane.b32.xlu2 %v106_v6, %s597_s7  ;;  %v143_v9 = vstv %s493_s6  ;;  %v98_v11 = vmul.f32 %v97_v8, %v649_v0  ;;  %s505_s13 = sld [smem:[#allocation2 + $0x16]] }
  0x17   :  { %v144_v12 = vmul.f32 %v143_v9, %v649_v0  ;;  %v166_v13 = vstv %s497_s0  ;;  %s509_s14 = sld [smem:[#allocation2 + $0x19]] }
  0x18   :  { %v128_v14 = vstv %s490_s9  ;;  %v167_v16 = vmul.f32 %v166_v13, %v649_v0  ;;  %s502_s15 = sld [smem:[#allocation2 + $0x14]] }
  0x19   :  { %v151_v15 = vstv %s494_s10  ;;  %v129_v17 = vmul.f32 %v128_v14, %v649_v0  ;;  %s506_s16 = sld [smem:[#allocation2 + $0x17]] }
  0x1a   :  { %v152_v18 = vmul.f32 %v151_v15, %v649_v0  ;;  %v174_v19 = vstv %s498_s11  ;;  %s510_s17 = sld [smem:[#allocation2 + $0x1a]]  ;;  %s599_s11 = smov 14  }
  0x1b   :  { %v189_v20 = vstv %s501_s12  ;;  %v175_v22 = vmul.f32 %v174_v19, %v649_v0  ;;  %s513_s18 = sld [smem:[#allocation2 + $0x1c]] }
  0x1c   :  { %123 = vrot.lane.b32.xlu1 %v121_v10, %s598_s8  ;;  %v212_v21 = vstv %s505_s13  ;;  %v190_v23 = vmul.f32 %v189_v20, %v649_v0  ;;  %s517_s19 = sld [smem:[#allocation2 + $0x1f]] }
  0x1d   :  { %100 = vrot.lane.b32.xlu0 %v98_v11, %s598_s8  ;;  %v213_v24 = vmul.f32 %v212_v21, %v649_v0  ;;  %v235_v25 = vstv %s509_s14  ;;  %s521_s20 = sld [smem:[#allocation2 + $0x22]]  ;;  %s600_s14 = smov 56  }
  0x1e   :  { %146 = vrot.lane.b32.xlu2 %v144_v12, %s598_s8  ;;  %v197_v26 = vstv %s502_s15  ;;  %v236_v28 = vmul.f32 %v235_v25, %v649_v0  ;;  %s514_s21 = sld [smem:[#allocation2 + $0x1d]]  ;;  %s601_s15 = smov 28  }
  0x1f   :  { %v220_v27 = vstv %s506_s16  ;;  %v198_v29 = vmul.f32 %v197_v26, %v649_v0  ;;  %s518_s22 = sld [smem:[#allocation2 + $0x20]] }
  0x20   :  { %v221_v30 = vmul.f32 %v220_v27, %v649_v0  ;;  %v243_v31 = vstv %s510_s17  ;;  %s522_s23 = sld [smem:[#allocation2 + $0x23]] }
  0x21   :  { %v258_v32 = vstv %s513_s18  ;;  %v244_v34 = vmul.f32 %v243_v31, %v649_v0  ;;  %s478_s24 = sld [smem:[#allocation2 + $0x1]]  ;;  %s602_s18 = smov 42  }
  0x22   :  { %v281_v33 = vstv %s517_s19  ;;  %v259_v35 = vmul.f32 %v258_v32, %v649_v0  ;;  %s479_s25 = sld [smem:[#allocation2 + $0x2]] }
  0x23   :  { %v282_v36 = vmul.f32 %v281_v33, %v649_v0  ;;  %v304_v37 = vstv %s521_s20  ;;  %s492_s26 = sld [smem:[#allocation2 + $0xc]]  ;;  %s603_s20 = smov 98  }
  0x24   :  { %169 = vrot.lane.b32.xlu1 %v167_v16, %s598_s8  ;;  %v266_v38 = vstv %s514_s21  ;;  %v305_v40 = vmul.f32 %v304_v37, %v649_v0  ;;  %s480_s27 = sld [smem:[#allocation2 + $0x3]]  ;;  %s604_s21 = smov 70  }
  0x25   :  { %131 = vrot.lane.b32.xlu0 %v129_v17, %s597_s7  ;;  %v289_v39 = vstv %s518_s22  ;;  %v267_v41 = vmul.f32 %v266_v38, %v649_v0  ;;  %s504_s28 = sld [smem:[#allocation2 + $0x15]] }
  0x26   :  { %154 = vrot.lane.b32.xlu2 %v152_v18, %s597_s7  ;;  %v290_v42 = vmul.f32 %v289_v39, %v649_v0  ;;  %v312_v43 = vstv %s522_s23  ;;  %s484_s29 = sld [smem:[#allocation2 + $0x6]] }
  0x27   :  { %v313_v44 = vmul.f32 %v312_v43, %v649_v0  ;;  %v51_v45 = vstv %s478_s24  ;;  %s483_s1 = sld [smem:[#allocation5 + $0x1]]  ;;  %s605_s24 = smov 12  }
  0x28   :  { %v52_v46 = vmul.f32 %v51_v45, %v649_v0  ;;  %v59_v48 = vstv %s479_s25  ;;  %s495_s30 = sld [smem:[#allocation5 + $0x4]] }
  0x29   :  { %v60_v49 = vmul.f32 %v59_v48, %v649_v0  ;;  %v140_v52 = vstv %s492_s26  ;;  %s488_s2 = sld [smem:[#allocation2 + $0x9]]  ;;  %s606_s26 = smov 84  }
  0x2a   :  { %v71_v53 = vstv %s480_s27  ;;  %v141_v54 = vmul.f32 %v140_v52, %v649_v0  ;;  %s487_s6 = sld [smem:[#allocation5 + $0x2]] }
  0x2b   :  { %v72_v55 = vmul.f32 %v71_v53, %v649_v0  ;;  %v209_v61 = vstv %s504_s28  ;;  %s507_s0 = sld [smem:[#allocation5 + $0x7]]  ;;  %s607_s28 = smov 112  }
  0x2c   :  { %177 = vrot.lane.b32.xlu1 %v175_v22, %s597_s7  ;;  %v94_v62 = vstv %s484_s29  ;;  %v210_v3 = vmul.f32 %v209_v61, %v649_v0  ;;  %s705_s9 = sld [smem:[#allocation2 + $0x1e]] }
  0x2d   :  { %192 = vrot.lane.b32.xlu0 %v190_v23, %s598_s8  ;;  %v90_v63 = vstv %s483_s1  ;;  %v95_v4 = vmul.f32 %v94_v62, %v649_v0  ;;  %s707_s10 = sld [smem:[#allocation5 + $0x3]]  ;;  %s608_s1 = smov 26  }
  0x2e   :  { %215 = vrot.lane.b32.xlu2 %v213_v24, %s598_s8  ;;  %v159_v6 = vstv %s495_s30  ;;  %s712_s12 = sld [smem:[#allocation5 + $0x5]] }
  0x2f   :  { %v117_v7 = vstv %s488_s2  ;;  %s500_s13 = sld [smem:[#allocation2 + $0x12]] }
  0x30   :  { %v118_v13 = vmul.f32 %v117_v7, %v649_v0  ;;  %v113_v16 = vstv %s487_s6  ;;  %s519_s16 = sld [smem:[#allocation5 + $0xa]] }
  0x31   :  { %v228_v23 = vstv %s507_s0  ;;  %s508_s17 = sld [smem:[#allocation2 + $0x18]] }
  0x32   :  { %v278_v26 = vstv %s705_s9  ;;  %s503_s19 = sld [smem:[#allocation5 + $0x6]] }
  0x33   :  { %v279_v33 = vmul.f32 %v278_v26, %v649_v0  ;;  %s511_s22 = sld [smem:[#allocation5 + $0x8]]  ;;  %v400_v26 = vld [vmem:[%s796_s3 + $0x58] sm:$0xff] }
  0x34   :  { %238 = vrot.lane.b32.xlu1 %v236_v28, %s598_s8  ;;  %v136_v28 = vstv %s707_s10  ;;  %v182_v39 = vstv %s712_s12  ;;  %s512_s23 = sld [smem:[#allocation2 + $0x1b]] }
  0x35   :  { %200 = vrot.lane.b32.xlu0 %v198_v29, %s597_s7  ;;  %s520_s25 = sld [smem:[#allocation2 + $0x21]] }
  0x36   :  { %223 = vrot.lane.b32.xlu2 %v221_v30, %s597_s7  ;;  %s515_s27 = sld [smem:[#allocation5 + $0x9]] }
  0x37   :  { %s523_s29 = sld [smem:[#allocation5 + $0xb]] }
  0x39   :  { %v251_v62 = vstv %s511_s22 }
  0x3b   :  { %v301_v7 = vstv %s520_s25 }
  0x3c   :  { %246 = vrot.lane.b32.xlu1 %v244_v34, %s597_s7 }
  0x3d   :  { %261 = vrot.lane.b32.xlu0 %v259_v35, %s598_s8 }
  0x3e   :  { %284 = vrot.lane.b32.xlu2 %v282_v36, %s598_s8 }
  0x44   :  { %307 = vrot.lane.b32.xlu1 %v305_v40, %s598_s8 }
  0x45   :  { %269 = vrot.lane.b32.xlu0 %v267_v41, %s597_s7 }
  0x46   :  { %292 = vrot.lane.b32.xlu2 %v290_v42, %s597_s7  ;;  %v186_v42 = vstv %s500_s13 }
  0x47   :  { %v187_v48 = vmul.f32 %v186_v42, %v649_v0  ;;  %v409_v42 = vld [vmem:[%s796_s3 + $0xa0] sm:$0xff] }
  0x48   :  { %449 = vmatpush.msra.mxu1 %v409_v42 }
  0x4c   :  { %54 = vrot.lane.b32.xlu1 %v52_v46, %s598_s8  ;;  %s701_s8 = sld [smem:[#allocation2 + $0xf]] }
  0x4d   :  { %315 = vrot.lane.b32.xlu0 %v313_v44, %s597_s7  ;;  %v297_v44 = vstv %s519_s16 }
  0x4e   :  { %62 = vrot.lane.b32.xlu2 %v60_v49, %s597_s7 }
  0x52   :  { %v163_v18 = vstv %s701_s8  ;;  %s66_s8 = sld [smem:[#allocation5]] }
  0x53   :  { %v164_v27 = vmul.f32 %v163_v18, %v649_v0 }
  0x70   :  { %v109_v47 = vpop.permute.xlu2 %108 }
  0x78   :  { %v147_v50 = vpop.permute.xlu2 %146 }
  0x79   :  { %v149_v58 = vadd.f32 %v147_v50, %v141_v54 }
  0x80   :  { %v155_v51 = vpop.permute.xlu2 %154 }
  0x81   :  { %v157_v2 = vadd.f32 %v155_v51, %v149_v58  ;;  %v232_v51 = vstv %s508_s17 }
  0x83   :  { %v160_v11 = vadd.f32 %v159_v6, %v157_v2  ;;  %v255_v2 = vstv %s512_s23 }
  0x85   :  { %v161_v19 = vmax.f32 %v160_v11, 0.0 }
  0x86   :  { %v86_v56 = vpop.permute.xlu1 %85 }
  0x87   :  { %v78_v57 = vpop.permute.xlu0 %77 }
  0x88   :  { %v80_v59 = vadd.f32 %v78_v57, %v72_v55  ;;  %v216_v60 = vpop.permute.xlu2 %215  ;;  %v233_v55 = vmul.f32 %v232_v51, %v649_v0 }
  0x89   :  { %v218_v12 = vadd.f32 %v216_v60, %v210_v3 }
  0x8a   :  { %v88_v1 = vadd.f32 %v86_v56, %v80_v59  ;;  %v205_v56 = vstv %s503_s19  ;;  %s47_s19 = sld [smem:[#allocation2]] }
  0x8c   :  { %v91_v5 = vadd.f32 %v90_v63, %v88_v1 }
  0x8e   :  { %v124_v8 = vpop.permute.xlu1 %123  ;;  %v92_v9 = vmax.f32 %v91_v5, 0.0  ;;  %v256_v5 = vmul.f32 %v255_v2, %v649_v0 }
  0x8f   :  { %v101_v10 = vpop.permute.xlu0 %100  ;;  %v126_v20 = vadd.f32 %v124_v8, %v118_v13 }
  0x90   :  { %v103_v14 = vadd.f32 %v101_v10, %v95_v4  ;;  %324 = vrot.lane.b32.xlu0 %v92_v9, %s599_s11  ;;  %v224_v15 = vpop.permute.xlu2 %223  ;;  %v274_v9 = vstv %s515_s27 }
  0x91   :  { %v226_v21 = vadd.f32 %v224_v15, %v218_v12  ;;  %v302_v12 = vmul.f32 %v301_v7, %v649_v0 }
  0x92   :  { %v111_v17 = vadd.f32 %v109_v47, %v103_v14 }
  0x93   :  { %v229_v30 = vadd.f32 %v228_v23, %v226_v21  ;;  %v403_v23 = vld [vmem:[%s796_s3 + $0x70] sm:$0xff] }
  0x94   :  { %v114_v22 = vadd.f32 %v113_v16, %v111_v17  ;;  %v320_v17 = vstv %s523_s29 }
  0x95   :  { %v230_v36 = vmax.f32 %v229_v30, 0.0  ;;  %v396_v30 = vld [vmem:[%s796_s3 + $0x38] sm:$0xff] }
  0x96   :  { %v170_v24 = vpop.permute.xlu1 %169  ;;  %v115_v25 = vmax.f32 %v114_v22, 0.0  ;;  %v404_v22 = vld [vmem:[%s796_s3 + $0x78] sm:$0xff] }
  0x97   :  { %v132_v29 = vpop.permute.xlu0 %131  ;;  %v172_v35 = vadd.f32 %v170_v24, %v164_v27  ;;  %418 = vmatpush.msra.mxu0 %v404_v22  ;;  %v402_v24 = vld [vmem:[%s796_s3 + $0x68] sm:$0xff]  ;;  %v399_v27 = vld [vmem:[%s796_s3 + $0x50] sm:$0xff] }
  0x98   :  { %v134_v31 = vadd.f32 %v132_v29, %v126_v20  ;;  %336 = vrot.lane.b32.xlu0 %v161_v19, %s600_s14  ;;  %328 = vrot.lane.b32.xlu1 %v115_v25, %s601_s15  ;;  %v285_v32 = vpop.permute.xlu2 %284  ;;  %v401_v25 = vld [vmem:[%s796_s3 + $0x60] sm:$0xff] }
  0x99   :  { %v287_v38 = vadd.f32 %v285_v32, %v279_v33  ;;  %419 = vmatpush.msra.mxu0 %v403_v23  ;;  %v397_v29 = vld [vmem:[%s796_s3 + $0x40] sm:$0xff]  ;;  %v394_v32 = vld [vmem:[%s796_s3 + $0x28] sm:$0xff] }
  0x9a   :  { %v137_v34 = vadd.f32 %v136_v28, %v134_v31  ;;  %v398_v28 = vld [vmem:[%s796_s3 + $0x48] sm:$0xff]  ;;  %v395_v31 = vld [vmem:[%s796_s3 + $0x30] sm:$0xff]  ;;  %v393_v33 = vld [vmem:[%s796_s3 + $0x20] sm:$0xff] }
  0x9b   :  { %420 = vmatpush.msra.mxu0 %v402_v24 }
  0x9c   :  { %v138_v37 = vmax.f32 %v137_v34, 0.0  ;;  %v392_v34 = vld [vmem:[%s796_s3 + $0x18] sm:$0xff] }
  0x9d   :  { %421 = vmatpush.msra.mxu0 %v401_v25 }
  0x9e   :  { %332 = vrot.lane.b32.xlu2 %v138_v37, %s602_s18  ;;  %v178_v40 = vpop.permute.xlu1 %177 }
  0x9f   :  { %v180_v41 = vadd.f32 %v178_v40, %v172_v35  ;;  %v193_v43 = vpop.permute.xlu0 %192  ;;  %422 = vmatpush.msra.mxu0 %v400_v26  ;;  %v48_v35 = vstv %s47_s19  ;;  %v389_v40 = vld [vmem:[%s796_s3] sm:$0xff] }
  0xa0   :  { %348 = vrot.lane.b32.xlu0 %v230_v36, %s603_s20  ;;  %v293_v45 = vpop.permute.xlu2 %292  ;;  %v195_v53 = vadd.f32 %v193_v43, %v187_v48  ;;  %v391_v36 = vld [vmem:[%s796_s3 + $0x10] sm:$0xff]  ;;  %v49_v37 = vmul.f32 %v48_v35, %v649_v0  ;;  %v408_v0 = vld [vmem:[%s796_s3 + $0x98] sm:$0xff]  ;;  %s609_s20 = smov [#allocation7]  }
  0xa1   :  { %v183_v46 = vadd.f32 %v182_v39, %v180_v41  ;;  %v295_v47 = vadd.f32 %v293_v45, %v287_v38  ;;  %423 = vmatpush.msra.mxu0 %v399_v27  ;;  %v390_v38 = vld [vmem:[%s796_s3 + $0x8] sm:$0xff]  ;;  %450 = vmatpush.msra.mxu1 %v408_v0 }
  0xa3   :  { %v184_v49 = vmax.f32 %v183_v46, 0.0  ;;  %v298_v50 = vadd.f32 %v297_v44, %v295_v47  ;;  %424 = vmatpush.msra.mxu0 %v398_v28  ;;  %v407_v44 = vld [vmem:[%s796_s3 + $0x90] sm:$0xff]  ;;  %v67_v46 = vstv %s66_s8  ;;  %v406_v47 = vld [vmem:[%s796_s3 + $0x88] sm:$0xff] }
  0xa4   :  { %451 = vmatpush.msra.mxu1 %v407_v44 }
  0xa5   :  { %v299_v52 = vmax.f32 %v298_v50, 0.0  ;;  %340 = vrot.lane.b32.xlu1 %v184_v49, %s604_s21  ;;  %425 = vmatpush.msra.mxu0 %v397_v29  ;;  %s465_s21 = sshll.u32 %s609_s20, 4  ;;  %s466_s21 = int_to_ptr.vmem [resolvable:$true] %s465_s21 }
  0xa6   :  { %v239_v54 = vpop.permute.xlu1 %238  ;;  %452 = vmatpush.msra.mxu1 %v406_v47 }
  0xa7   :  { %v201_v57 = vpop.permute.xlu0 %200  ;;  %v241_v60 = vadd.f32 %v239_v54, %v233_v55  ;;  %426 = vmatpush.msra.mxu0 %v396_v30 }
  0xa8   :  { %v203_v58 = vadd.f32 %v201_v57, %v195_v53  ;;  %360 = vrot.lane.b32.xlu0 %v299_v52, %s605_s24  ;;  %v63_v43 = vpop.permute.xlu2 %62  ;;  %v405_v53 = vld [vmem:[%s796_s3 + $0x80] sm:$0xff]  ;;  %s467_s24 = sshll.u32 %s798_s5, 4  ;;  %s468_s24 = int_to_ptr.hbm [resolvable:$true] %s467_s24 }
  0xa9   :  { %427 = vmatpush.msra.mxu0 %v395_v31  ;;  %453 = vmatpush.msra.mxu1 %v405_v53 }
  0xaa   :  { %v206_v59 = vadd.f32 %v205_v56, %v203_v58 }
  0xab   :  { %428 = vmatpush.msra.mxu0 %v394_v32 }
  0xac   :  { %v207_v61 = vmax.f32 %v206_v59, 0.0 }
  0xad   :  { %429 = vmatpush.msra.mxu0 %v393_v33 }
  0xae   :  { %344 = vrot.lane.b32.xlu2 %v207_v61, %s606_s26  ;;  %v247_v63 = vpop.permute.xlu1 %246 }
  0xaf   :  { %v249_v1 = vadd.f32 %v247_v63, %v241_v60  ;;  %v262_v3 = vpop.permute.xlu0 %261  ;;  %430 = vmatpush.msra.mxu0 %v392_v34 }
  0xb0   :  { %v264_v8 = vadd.f32 %v262_v3, %v256_v5 }
  0xb1   :  { %v252_v4 = vadd.f32 %v251_v62, %v249_v1  ;;  %431 = vmatpush.msra.mxu0 %v391_v36 }
  0xb3   :  { %v253_v6 = vmax.f32 %v252_v4, 0.0  ;;  %432 = vmatpush.msra.mxu0 %v390_v38 }
  0xb5   :  { %352 = vrot.lane.b32.xlu1 %v253_v6, %s607_s28  ;;  %433 = vmatpush.msra.mxu0 %v389_v40 }
  0xb6   :  { %v308_v13 = vpop.permute.xlu1 %307 }
  0xb7   :  { %v270_v10 = vpop.permute.xlu0 %269  ;;  %v310_v16 = vadd.f32 %v308_v13, %v302_v12 }
  0xb8   :  { %v272_v11 = vadd.f32 %v270_v10, %v264_v8  ;;  %v540_v10 = vld [vmem:[%s797_s4] ss:$0 sm:$0xff] }
  0xba   :  { %v275_v14 = vadd.f32 %v274_v9, %v272_v11 }
  0xbc   :  { %v276_v15 = vmax.f32 %v275_v14, 0.0 }
  0xbe   :  { %356 = vrot.lane.b32.xlu2 %v276_v15, %s597_s7  ;;  %v55_v39 = vpop.permute.xlu1 %54 }
  0xbf   :  { %v316_v18 = vpop.permute.xlu0 %315  ;;  %v57_v41 = vadd.f32 %v55_v39, %v49_v37 }
  0xc0   :  { %v318_v19 = vadd.f32 %v316_v18, %v310_v16 }
  0xc1   :  { %v65_v45 = vadd.f32 %v63_v43, %v57_v41 }
  0xc2   :  { %v321_v20 = vadd.f32 %v320_v17, %v318_v19 }
  0xc3   :  { %v68_v48 = vadd.f32 %v67_v46, %v65_v45 }
  0xc4   :  { %v322_v21 = vmax.f32 %v321_v20, 0.0 }
  0xc5   :  { %v69_v50 = vmax.f32 %v68_v48, 0.0 }
  0xc6   :  { %364 = vrot.lane.b32.xlu1 %v322_v21, %s608_s1 }
  0xf8   :  { %v333_v52 = vpop.permute.xlu2 %332 }
 0x102   :  { %v325_v49 = vpop.permute.xlu0 %324 }
 0x103   :  { %v368_v54 = vsel %vm367_vm0, %v69_v50, %v325_v49 }
 0x108   :  { %v345_v59 = vpop.permute.xlu2 %344 }
 0x10a   :  { %v329_v51 = vpop.permute.xlu1 %328  ;;  %v337_v56 = vpop.permute.xlu0 %336 }
 0x10b   :  { %v370_v55 = vsel %vm369_vm1, %v368_v54, %v329_v51 }
 0x10c   :  { %v372_v57 = vsel %vm371_vm2, %v370_v55, %v333_v52 }
 0x10d   :  { %v374_v60 = vsel %vm373_vm3, %v372_v57, %v337_v56 }
 0x112   :  { %v349_v63 = vpop.permute.xlu0 %348 }
 0x117   :  { %v341_v58 = vpop.permute.xlu1 %340 }
 0x118   :  { %v376_v61 = vsel %vm375_vm4, %v374_v60, %v341_v58  ;;  %v357_v3 = vpop.permute.xlu2 %356 }
 0x119   :  { %v378_v62 = vsel %vm377_vm5, %v376_v61, %v345_v59 }
 0x11a   :  { %v380_v2 = vsel %vm379_vm6, %v378_v62, %v349_v63  ;;  %v361_v6 = vpop.permute.xlu0 %360 }
 0x11b   :  { %v386_v7 = vsel %vm385_vm9, %v357_v3, %v361_v6 }
 0x127   :  { %v353_v1 = vpop.permute.xlu1 %352 }
 0x128   :  { %v382_v4 = vsel %vm381_vm7, %v380_v2, %v353_v1 }
 0x129   :  { %v384_v5 = vsel %vm383_vm8, %v382_v4, %v357_v3 }
 0x12a   :  { %434 = vmatmul.f32.vlgmr.msra.gmra.mxu0 %v384_v5 }
 0x138   :  { %v365_v8 = vpop.permute.xlu1 %364 }
 0x139   :  { %v388_v9 = vsel %vm387_vm10, %v386_v7, %v365_v8 }
 0x13a   :  { %524 = vmatmul.msk.f32.vlgmr.msra.gmra.mxu1 %vm414_vm11, %v388_v9 }
 0x1a7   :  { %v435_v11 = vpop.f32.mrf.mxu0 }
 0x1a8   :  { %v436_v12 = vadd.f32 %v540_v10, %v435_v11 }
 0x1b7   :  { %v455_v13 = vpop.f32.mrf.mxu1 }
 0x1b8   :  { %v456_v14 = vadd.f32 %v455_v13, %v436_v12 }
 0x1ba   :  { %459 = vst.msk [vmem:[#allocation7] sm:$0x3] %vm458_vm12, %v456_v14 }
 0x1bb   :  { %470 = dma.vmem_to_hbm [thread:$0]  %s466_s21, 32, %s468_s24, [#allocation3]  }
 0x1bc   :  { %593 = dma.done.wait [#allocation3], 32  }
 0x1bd   :  { %594 = vsyncadd [#allocation3], 4294967264 }
 0x1be   :  { %475 = vsyncpa [#allocation3], 1 }
 0x1bf   :  { %476 = vsyncpa [#allocation4], 1 }
 0x1c0   :  { %477 = vsyncpa [#allocation6], 1 }

</bundles_post_ra>
